<compile_context>
chip_gen: v6e
topology: v6e:2x2x1
jax: 0.10.0
libtpu: 0.0.40
codegen_flags: <defaults>
</compile_context>

<pallas_src>
import functools

import jax
import jax.numpy as jnp
from jax.experimental import pallas as pl
from jax.experimental.pallas import tpu as pltpu


_COMPUTE_DTYPE = jnp.bfloat16  # MXU-native on v6e/v7x; halves HBM bytes everywhere.


# ----------------------------------------------------------------------------
# tiling helpers
# ----------------------------------------------------------------------------


def _pick_tile(size, unit, cap):
    """Largest multiple of `unit` <= cap; prefer >=2 grid steps (v7x dual-TC)."""
    if size <= unit:
        return size
    t = min(cap, (size // unit) * unit)
    if t >= size:
        # A single-step 'parallel' grid would leave one v7x TensorCore idle.
        half = ((size // 2) // unit) * unit
        t = max(unit, half)
    return t


def _contract_tile(k, cap=2048):
    """Contraction-dim tile. Must divide K exactly (padding a contraction with
    out-of-bounds garbage would corrupt the accumulation)."""
    if k <= cap:
        return k
    t = (cap // 128) * 128
    while t > 128 and k % t != 0:
        t -= 128
    return t if (t > 0 and k % t == 0) else k


# ----------------------------------------------------------------------------
# GradientScalarLayer (custom VJP; forward is identity, backward is weight * g)
# ----------------------------------------------------------------------------


@functools.partial(jax.custom_vjp, nondiff_argnums=(1,))
def gradient_scalar(x, weight):
    # PyTorch forward is `input.view_as(input)` -> identity; no kernel, no HBM copy.
    return x


def _gs_fwd(x, weight):
    return x, None


def _gs_bwd(weight, _res, g):
    # Plain scalar multiply: XLA fuses it into the producing backward op, so it is
    # free. A standalone Pallas kernel would add one full HBM read+write of the grad.
    return (jnp.asarray(weight, dtype=g.dtype) * g,)


gradient_scalar.defvjp(_gs_fwd, _gs_bwd)


class GradientScalarLayer:
    """JAX port of the PyTorch GradientScalarLayer."""

    def __init__(self, weight):
        self.weight = float(weight)

    def __call__(self, x):
        return gradient_scalar(x, self.weight)

    def __repr__(self):
        return f"GradientScalarLayer(weight={self.weight})"


# ----------------------------------------------------------------------------
# Fused DAImgHead kernel: relu(conv1x1 C_in->128) -> conv1x1 128->1, channel-first
# ----------------------------------------------------------------------------


def _img_head_kernel(x_ref, w1_ref, b1_ref, w2_ref, b2_ref, o_ref):
    x = x_ref[0]                                                        # (C_in, tn) bf16
    # Layer 1 on the MXU: (H, C_in) @ (C_in, tn) -> (H, tn), f32 accumulation.
    h = jnp.dot(w1_ref[...], x, preferred_element_type=jnp.float32)
    h = jnp.maximum(h + b1_ref[...], 0.0)                               # f32 epilogue (v5e-safe)
    # Layer 2 (1 output channel) as a weighted sublane reduction (VPU + XLU).
    y = jnp.sum(h * w2_ref[...], axis=0, keepdims=True)                 # (1, tn)
    o_ref[0] = (y + b2_ref[...]).astype(o_ref.dtype)


def da_img_head_fused(x, w1, b1, w2, b2, *, lane_tile=1024):
    """x: (B, C_in, N); w1: (H=128, C_in); b1: (H,); w2: (1, H); b2: (1,).
    Returns (B, 1, N) float32 — lane-dense, unpadded 1-channel output."""
    B, C_in, N = x.shape
    H = w1.shape[0]

    xq = x.astype(_COMPUTE_DTYPE)
    w1q = w1.astype(_COMPUTE_DTYPE)
    w2c = w2.reshape(H, 1).astype(jnp.float32)       # column for sublane-broadcast
    b1c = b1.reshape(H, 1).astype(jnp.float32)
    b2c = b2.reshape(1, 1).astype(jnp.float32)

    tn = _pick_tile(N, 128, lane_tile)
    grid = (B, pl.cdiv(N, tn))

    cost = pl.CostEstimate(
        flops=2 * B * N * H * (C_in + 1),
        transcendentals=0,
        bytes_accessed=xq.size * 2 + w1q.size * 2 + (w2c.size + b1c.size) * 4
        + B * N * 4,
    )

    return pl.pallas_call(
        _img_head_kernel,
        out_shape=jax.ShapeDtypeStruct((B, 1, N), jnp.float32),
        grid=grid,
        in_specs=[
            pl.BlockSpec((1, C_in, tn), lambda b, j: (b, 0, j)),
            pl.BlockSpec((H, C_in), lambda b, j: (0, 0)),
            pl.BlockSpec((H, 1), lambda b, j: (0, 0)),
            pl.BlockSpec((H, 1), lambda b, j: (0, 0)),
            pl.BlockSpec((1, 1), lambda b, j: (0, 0)),
        ],
        out_specs=pl.BlockSpec((1, 1, tn), lambda b, j: (b, 0, j)),
        compiler_params=pltpu.CompilerParams(
            dimension_semantics=("parallel", "parallel")),
        cost_estimate=cost,
    )(xq, w1q, b1c, w2c, b2c)


# ----------------------------------------------------------------------------
# Fused DAInsHead kernel: relu(C_in->256) -> relu(256->256) -> 256->1, K-tiled
# ----------------------------------------------------------------------------


def _ins_head_kernel(x_ref, w1_ref, b1_ref, w2_ref, b2_ref, w3_ref, b3_ref,
                     o_ref, acc_ref):
    k = pl.program_id(1)

    @pl.when(k == 0)
    def _():
        acc_ref[...] = jnp.zeros_like(acc_ref)

    # Layer 1, K-tiled: accumulate (tm, tk) @ (tk, H) in f32 scratch.
    acc_ref[...] += jnp.dot(x_ref[...], w1_ref[...],
                            preferred_element_type=jnp.float32)

    @pl.when(k == pl.num_programs(1) - 1)
    def _():
        h = jnp.maximum(acc_ref[...] + b1_ref[...], 0.0)                 # (tm, H) f32
        h = jnp.dot(h.astype(_COMPUTE_DTYPE), w2_ref[...],
                    preferred_element_type=jnp.float32)                  # (tm, H)
        h = jnp.maximum(h + b2_ref[...], 0.0)
        # Final 1-channel conv as a weighted lane reduction (VPU + XLU).
        y = jnp.sum(h * w3_ref[...], axis=1, keepdims=True)              # (tm, 1)
        o_ref[...] = (y + b3_ref[...]).astype(o_ref.dtype)


def da_ins_head_fused(x2d, w1, b1, w2, b2, w3, b3, *, row_tile=256, k_tile=2048):
    """x2d: (M, C_in); w1: (C_in, 256); w2: (256, 256); w3: (256, 1).
    Returns (M, 1) float32. The contraction dim is tiled so reshape=True
    (C_in = 512*64 = 32768) stays within VMEM on every generation."""
    M, K = x2d.shape
    H = w1.shape[1]

    xq = x2d.astype(_COMPUTE_DTYPE)
    w1q = w1.astype(_COMPUTE_DTYPE)
    w2q = w2.astype(_COMPUTE_DTYPE)
    w3r = w3.reshape(1, H).astype(jnp.float32)
    b1c = b1.reshape(1, H).astype(jnp.float32)
    b2c = b2.reshape(1, H).astype(jnp.float32)
    b3c = b3.reshape(1, 1).astype(jnp.float32)

    tm = _pick_tile(M, 8, row_tile)
    tk = _contract_tile(K, k_tile)
    grid = (pl.cdiv(M, tm), K // tk)

    cost = pl.CostEstimate(
        flops=2 * M * (K * H + H * H + H),
        transcendentals=0,
        bytes_accessed=xq.size * 2 + (w1q.size + w2q.size) * 2 + w3r.size * 4
        + M * 4,
    )

    return pl.pallas_call(
        _ins_head_kernel,
        out_shape=jax.ShapeDtypeStruct((M, 1), jnp.float32),
        grid=grid,
        in_specs=[
            pl.BlockSpec((tm, tk), lambda i, k: (i, k)),
            pl.BlockSpec((tk, H), lambda i, k: (k, 0)),
            pl.BlockSpec((1, H), lambda i, k: (0, 0)),
            pl.BlockSpec((H, H), lambda i, k: (0, 0)),
            pl.BlockSpec((1, H), lambda i, k: (0, 0)),
            pl.BlockSpec((1, H), lambda i, k: (0, 0)),
            pl.BlockSpec((1, 1), lambda i, k: (0, 0)),
        ],
        out_specs=pl.BlockSpec((tm, 1), lambda i, k: (i, 0)),
        scratch_shapes=[pltpu.VMEM((tm, H), jnp.float32)],
        compiler_params=pltpu.CompilerParams(
            dimension_semantics=("parallel", "arbitrary")),
        cost_estimate=cost,
    )(xq, w1q, b1c, w2q, b2c, w3r, b3c)


# ----------------------------------------------------------------------------
# DA heads (weights initialized like the PyTorch module: normal std=1e-3, bias 0)
# ----------------------------------------------------------------------------


class DAImgHead:
    """Conv1d(C_in->128,1) -> ReLU -> Conv1d(128->1,1), fused in one pallas_call."""

    def __init__(self, key, in_channels):
        k1, k2 = jax.random.split(key)
        std = 1e-3
        # PyTorch Conv1d weight layout (C_out, C_in) with kernel_size=1 squeezed.
        self.w1 = std * jax.random.normal(k1, (128, in_channels), jnp.float32)
        self.b1 = jnp.zeros((128,), jnp.float32)
        self.w2 = std * jax.random.normal(k2, (1, 128), jnp.float32)
        self.b2 = jnp.zeros((1,), jnp.float32)

    def __call__(self, x):  # (B, C_in, N) -> (B, 1, N)
        return da_img_head_fused(x, self.w1, self.b1, self.w2, self.b2)


class DAInsHead:
    """Conv1d(C_in->256,1) -> ReLU -> Conv1d(256->256,1) -> ReLU -> Conv1d(256->1,1)."""

    def __init__(self, key, in_channels):
        k1, k2, k3 = jax.random.split(key, 3)
        std = 1e-3
        # Stored as (C_in, C_out) so the per-point matmul is x_rows @ w.
        self.w1 = std * jax.random.normal(k1, (in_channels, 256), jnp.float32)
        self.b1 = jnp.zeros((256,), jnp.float32)
        self.w2 = std * jax.random.normal(k2, (256, 256), jnp.float32)
        self.b2 = jnp.zeros((256,), jnp.float32)
        self.w3 = std * jax.random.normal(k3, (256, 1), jnp.float32)
        self.b3 = jnp.zeros((1,), jnp.float32)

    def _run(self, x2d):
        return da_ins_head_fused(x2d, self.w1, self.b1, self.w2, self.b2,
                                 self.w3, self.b3)

    def __call__(self, x):  # (M, C_in, N) -> (M, 1, N)
        M, C, N = x.shape
        if N == 1:
            # (M, C, 1) -> (M, C) is a free contiguous reshape (no transpose).
            y = self._run(x.reshape(M, C))
            return y.reshape(M, 1, 1)
        # Generic N > 1 path (not used by GeneralizedPointRCNN): per-point rows.
        x2d = jnp.transpose(x, (0, 2, 1)).reshape(M * N, C)
        y = self._run(x2d)
        return jnp.transpose(y.reshape(M, N, 1), (0, 2, 1))


class DARcnn:
    def __init__(self, key, grl_weight=0.1, reshape=False):
        self.reshape = reshape
        self.grl_ins = GradientScalarLayer(-1.0 * grl_weight)
        num_ins_inputs = 512 * (64 if reshape else 1)
        self.inshead = DAInsHead(key, num_ins_inputs)

    def __call__(self, ins_features):  # (B*64, 512, 1)
        t = self.grl_ins(ins_features)
        if self.reshape:
            B = t.shape[0] // 64
            t = t.reshape(B, -1, 1)  # K = 512*64 handled by the K-tiled ins kernel
        return {"da_ins": self.inshead(t)}


class DARpn:
    def __init__(self, key, grl_weight=0.1, pool=False, reshape=False,
                 num_points=16384):
        self.pool = pool
        self.reshape = reshape
        self.grl_img = GradientScalarLayer(-1.0 * grl_weight)
        in_channels = 128 * (num_points if reshape else 1)
        self.imghead = DAImgHead(key, in_channels)

    def __call__(self, img_features):  # (B, 128, N)
        t = img_features
        if self.pool:
            # AvgPool1d(16384, 1) over N == 16384 -> global average over points.
            t = jnp.mean(t, axis=-1, keepdims=True)
        if self.reshape:
            # TODO(synk): reshape=True implies in_channels = 128*num_points (a multi-GiB
            # conv weight) and an un-tiled contraction in the img kernel; unexercised.
            t = t.reshape(t.shape[0], -1, 1)
        t = self.grl_img(t)
        return {"da_img": self.imghead(t)}


class GeneralizedPointRCNN:
    """DA branch of GeneralizedPointRCNN (Pallas). See TODO at top of file."""

    def __init__(self, key, img_grl_weight=0.1, ins_grl_weight=0.1):
        k1, k2 = jax.random.split(key)
        self.da_rpn = DARpn(k1, grl_weight=img_grl_weight)
        self.da_rcnn = DARcnn(k2, grl_weight=ins_grl_weight)

    def __call__(self, backbone_features, l_features):
        out = {}
        out.update(self.da_rpn(backbone_features))   # image-level DA head
        out.update(self.da_rcnn(l_features))         # instance-level DA head
        return out


# ----------------------------------------------------------------------------
# demo / self-check
# ----------------------------------------------------------------------------

if __name__ == "__main__":
    key = jax.random.PRNGKey(0)
    kp, kx1, kx2 = jax.random.split(key, 3)

    B, N_PTS = 2, 256
    # Shapes implied by the PyTorch module (kept small):
    #   img_features : (B, 128, N)    backbone semantic features
    #   ins_features : (B*64, 512, 1) per-RoI pooled features
    img_features = jax.random.normal(kx1, (B, 128, N_PTS), dtype=jnp.float32)
    ins_features = jax.random.normal(kx2, (B * 64, 512, 1), dtype=jnp.float32)

    model = GeneralizedPointRCNN(kp, img_grl_weight=0.1, ins_grl_weight=0.1)
    out = jax.block_until_ready(model(img_features, ins_features))
    da_img, da_ins = out["da_img"], out["da_ins"]
    assert da_img.shape == (B, 1, N_PTS)
    assert da_ins.shape == (B * 64, 1, 1)

    # Pure-JAX reference mirroring the kernel numerics (bf16 MXU inputs, f32 accum).
    def q(a):
        return a.astype(jnp.bfloat16).astype(jnp.float32)

    def head_ref(rows, layers):
        t = rows
        for w, b, relu in layers:
            t = jnp.dot(q(t), q(w), preferred_element_type=jnp.float32) + b
            if relu:
                t = jnp.maximum(t, 0.0)
        return t

    ih = model.da_rpn.imghead
    img_rows = jnp.transpose(img_features, (0, 2, 1)).reshape(B * N_PTS, 128)
    ref_img = head_ref(img_rows, [(ih.w1.T, ih.b1, True), (ih.w2.T, ih.b2, False)])
    ref_img = jnp.transpose(ref_img.reshape(B, N_PTS, 1), (0, 2, 1))

    nh = model.da_rcnn.inshead
    ins_rows = ins_features.reshape(B * 64, 512)
    ref_ins = head_ref(
        ins_rows,
        [(nh.w1, nh.b1, True), (nh.w2, nh.b2, True), (nh.w3, nh.b3, False)],
    ).reshape(B * 64, 1, 1)

    assert jnp.allclose(da_img, ref_img, rtol=2e-2, atol=1e-6), float(
        jnp.max(jnp.abs(da_img - ref_img)))
    assert jnp.allclose(da_ins, ref_ins, rtol=2e-2, atol=1e-6), float(
        jnp.max(jnp.abs(da_ins - ref_ins)))

    # GRL semantics: forward is identity, backward scales the gradient.
    grl = GradientScalarLayer(weight=-0.1)
    y = jax.block_until_ready(grl(ins_features))
    assert y.shape == ins_features.shape and jnp.allclose(y, ins_features)

    g = jax.block_until_ready(
        jax.grad(lambda x: jnp.sum(grl(x) * 2.0))(ins_features)
    )
    assert jnp.allclose(g, -0.1 * 2.0 * jnp.ones_like(ins_features), atol=1e-6)

    print("KERNEL_OK")
</pallas_src>

<mosaic_0001>
module attributes {stable_mosaic.version = 11 : i64} {
  func.func @_img_head_kernel(%arg0: i32, %arg1: i32, %arg2: memref<1x128x128xbf16, #tpu.memory_space<vmem>>, %arg3: memref<128x128xbf16, #tpu.memory_space<vmem>>, %arg4: memref<128x1xf32, #tpu.memory_space<vmem>>, %arg5: memref<128x1xf32, #tpu.memory_space<vmem>>, %arg6: memref<1x1xf32, #tpu.memory_space<vmem>>, %arg7: memref<1x1x128xf32, #tpu.memory_space<vmem>>) attributes {dimension_semantics = [#tpu.dimension_semantics<parallel>, #tpu.dimension_semantics<parallel>], iteration_bounds = array<i64: 2, 2>, scalar_prefetch = 0 : i64, scratch_operands = 0 : i64, tpu.core_type = #tpu.core_type<tc>, window_params = [{transform_indices = @transform_0, window_bounds = array<i64: 1, 128, 128>}, {pipeline_mode = #tpu.pipeline_mode<synchronous>, transform_indices = @transform_1, window_bounds = array<i64: 128, 128>}, {pipeline_mode = #tpu.pipeline_mode<synchronous>, transform_indices = @transform_2, window_bounds = array<i64: 128, 1>}, {pipeline_mode = #tpu.pipeline_mode<synchronous>, transform_indices = @transform_3, window_bounds = array<i64: 128, 1>}, {pipeline_mode = #tpu.pipeline_mode<synchronous>, transform_indices = @transform_4, window_bounds = array<i64: 1, 1>}, {transform_indices = @transform_5, window_bounds = array<i64: 1, 1, 128>}]} {
    %c0 = arith.constant 0 : index
    %c0_0 = arith.constant 0 : index
    %c0_1 = arith.constant 0 : index
    %0 = vector.load %arg2[%c0, %c0_0, %c0_1] : memref<1x128x128xbf16, #tpu.memory_space<vmem>>, vector<1x128x128xbf16>
    %1 = vector.shape_cast %0 : vector<1x128x128xbf16> to vector<128x128xbf16>
    %c0_2 = arith.constant 0 : index
    %c0_3 = arith.constant 0 : index
    %2 = vector.load %arg3[%c0_2, %c0_3] : memref<128x128xbf16, #tpu.memory_space<vmem>>, vector<128x128xbf16>
    %cst = arith.constant dense<0.000000e+00> : vector<128x128xf32>
    %3 = tpu.matmul %2, %1, %cst {dimension_numbers = #tpu.dot_dimension_numbers<[1], [0], [0], [1], [0, 0, 1, 1], [], []>} : vector<128x128xbf16>, vector<128x128xbf16>, vector<128x128xf32> -> vector<128x128xf32>
    %c0_4 = arith.constant 0 : index
    %c0_5 = arith.constant 0 : index
    %4 = vector.load %arg4[%c0_4, %c0_5] : memref<128x1xf32, #tpu.memory_space<vmem>>, vector<128x1xf32>
    %5 = vector.broadcast %4 : vector<128x1xf32> to vector<128x128xf32>
    %6 = arith.addf %3, %5 : vector<128x128xf32>
    %cst_6 = arith.constant 0.000000e+00 : f32
    %7 = vector.broadcast %cst_6 : f32 to vector<128x128xf32>
    %8 = arith.maximumf %6, %7 : vector<128x128xf32>
    %c0_7 = arith.constant 0 : index
    %c0_8 = arith.constant 0 : index
    %9 = vector.load %arg5[%c0_7, %c0_8] : memref<128x1xf32, #tpu.memory_space<vmem>>, vector<128x1xf32>
    %10 = vector.broadcast %9 : vector<128x1xf32> to vector<128x128xf32>
    %11 = arith.mulf %8, %10 : vector<128x128xf32>
    %cst_9 = arith.constant dense<0.000000e+00> : vector<128xf32>
    %12 = vector.multi_reduction <add>, %11, %cst_9 [0] : vector<128x128xf32> to vector<128xf32>
    %13 = vector.shape_cast %12 : vector<128xf32> to vector<1x128xf32>
    %c0_10 = arith.constant 0 : index
    %c0_11 = arith.constant 0 : index
    %14 = vector.load %arg6[%c0_10, %c0_11] : memref<1x1xf32, #tpu.memory_space<vmem>>, vector<1x1xf32>
    %15 = vector.broadcast %14 : vector<1x1xf32> to vector<1x128xf32>
    %16 = arith.addf %13, %15 : vector<1x128xf32>
    %c0_12 = arith.constant 0 : index
    %c0_13 = arith.constant 0 : index
    %c0_14 = arith.constant 0 : index
    %17 = vector.load %arg7[%c0_12, %c0_13, %c0_14] : memref<1x1x128xf32, #tpu.memory_space<vmem>>, vector<1x1x128xf32>
    %18 = vector.shape_cast %17 : vector<1x1x128xf32> to vector<1x128xf32>
    %19 = vector.shape_cast %16 : vector<1x128xf32> to vector<1x1x128xf32>
    tpu.vector_store %arg7[%c0_12, %c0_13, %c0_14], %19 {strides = array<i32>} : memref<1x1x128xf32, #tpu.memory_space<vmem>>, vector<1x1x128xf32>,
    return
  }
  func.func @transform_0(%arg0: i32, %arg1: i32) -> (i32, i32, i32) {
    %c0_i32 = arith.constant 0 : i32
    %c0_i32_0 = arith.constant 0 : i32
    return %arg0, %c0_i32, %arg1 : i32, i32, i32
  }
  func.func @transform_1(%arg0: i32, %arg1: i32) -> (i32, i32) {
    %c0_i32 = arith.constant 0 : i32
    %c0_i32_0 = arith.constant 0 : i32
    %c0_i32_1 = arith.constant 0 : i32
    return %c0_i32, %c0_i32_0 : i32, i32
  }
  func.func @transform_2(%arg0: i32, %arg1: i32) -> (i32, i32) {
    %c0_i32 = arith.constant 0 : i32
    %c0_i32_0 = arith.constant 0 : i32
    %c0_i32_1 = arith.constant 0 : i32
    return %c0_i32, %c0_i32_0 : i32, i32
  }
  func.func @transform_3(%arg0: i32, %arg1: i32) -> (i32, i32) {
    %c0_i32 = arith.constant 0 : i32
    %c0_i32_0 = arith.constant 0 : i32
    %c0_i32_1 = arith.constant 0 : i32
    return %c0_i32, %c0_i32_0 : i32, i32
  }
  func.func @transform_4(%arg0: i32, %arg1: i32) -> (i32, i32) {
    %c0_i32 = arith.constant 0 : i32
    %c0_i32_0 = arith.constant 0 : i32
    %c0_i32_1 = arith.constant 0 : i32
    return %c0_i32, %c0_i32_0 : i32, i32
  }
  func.func @transform_5(%arg0: i32, %arg1: i32) -> (i32, i32, i32) {
    %c0_i32 = arith.constant 0 : i32
    %c0_i32_0 = arith.constant 0 : i32
    return %arg0, %c0_i32, %arg1 : i32, i32, i32
  }
}

</mosaic_0001>

<bundles_post_ra>
// kernel: tpu_custom_call.1
= control target key start
LH: loop header
LB: loop body
LE: loop exit
PB: predicated region body
PF: predicated region fallthrough
CT: control target
= control target key end

     0   :  { %s1587_s0 = inlined_call_operand.vmem [shape: bf16[2,128,256], index: 0, kind: input, shape index: {}]   ;;  %s1588_s1 = inlined_call_operand.hbm [shape: bf16[128,128], index: 1, kind: input, shape index: {}]   ;;  %s1589_s2 = inlined_call_operand.vmem [shape: f32[128,1], index: 2, kind: input, shape index: {}]   ;;  %s1590_s3 = inlined_call_operand.vmem [shape: f32[128,1], index: 3, kind: input, shape index: {}]   ;;  %s1591_s4 = inlined_call_operand.<no memory space> [shape: f32[1,1], index: 4, kind: input, shape index: {}]   ;;  %s1592_s5 = inlined_call_operand.hbm [shape: f32[2,1,256], index: 5, kind: output, shape index: {}]  }
   0x1   :  { %v10_v0 = vstv %s1591_s4 }
   0x2   :  { %11 = vst [vmem:[#allocation2] sm:$0x1] %v10_v0 }
   0x3   :  { %12 = vsyncpa [#allocation5], 0 }
   0x4   :  { %13 = vsyncpa [#allocation6], 0 }
   0x5   :  { %15 = vsyncpa [#allocation6 + $0x1], 0  ;;  %s1306_s20 = smov 0   ;;  %s1308_s21 = smov 0  }
   0x6   :  { %s1310_s22 = smov 0   ;;  %s1312_s23 = smov 0  }
   0x7   :  { %s1314_s24 = smov 0   ;;  %s1316_s25 = smov 0  }
   0x8   :  { %s1318_s26 = smov 0   ;;  %s1320_s27 = smov 0  }
   0x9 LB: > { %s946_s4 = sadd.s32 4294967295, %s1266_s27   ;;  %s947_s28 = sadd.s32 4294967294, %s1266_s27   ;;  %s1266_s27 = sphi %s1320_s27, %s21_s27   ;;  %s1262_s26 = sphi %s1318_s26, %s1615_s26   ;;  %s1258_s25 = sphi %s1316_s25, %s1614_s25   ;;  %s1254_s24 = sphi %s1314_s24, %s1613_s24   ;;  %s1250_s23 = sphi %s1312_s23, %s1612_s23   ;;  %s1246_s22 = sphi %s1310_s22, %s1611_s22   ;;  %s1242_s21 = sphi %s1308_s21, %s1610_s21   ;;  %s1238_s20 = sphi %s1306_s20, %s1609_s20  }
   0xa   : > { %s30_s29 = sadd.s32 1, %s1258_s25  ;;  %s33_s30 = sadd.s32 1, %s1262_s26 }
   0xb   : > { %p31_p0 = scmp.ge.s32.totalorder %s30_s29, 2  ;;  %s42_s6 = sadd.s32 1, %s1246_s22 }
   0xc   : > { %p49_p1 = scmp.ne.s32.totalorder %s1246_s22, %s1242_s21  ;;  %p50_p2 = scmp.eq.s32.totalorder %s1266_s27, 0 }
   0xd   : > { %s1617_s29 = smov (%p31_p0, %s30_s29), 0  ;;  %s1619_s30 = smov (!%p31_p0, %s33_s30), %s1262_s26 }
   0xe   : > { %1596 = sst [smem:[#allocation10_spill]] %s1617_s29  ;;  %s38_s7 = ssub.s32 %s1258_s25, %s1617_s29 }
   0xf   : > { %p1359_p3 = por %p50_p2, %p49_p1  ;;  %p35_p4 = scmp.ge.s32.totalorder %s1619_s30, 2 }
  0x10   : > { %p165_p5 = scmp.eq.s32.totalorder %s946_s4, 3  ;;  %p170_p6 = scmp.ne.s32.totalorder %s1242_s21, %s1238_s20 }
  0x11   : > { %p171_p7 = scmp.eq.s32.totalorder %s947_s28, 3  ;;  %s1621_s30 = smov (%p35_p4, %s1619_s30), 0 }
  0x12   : > { %1598 = sst [smem:[#allocation11_spill]] %s1621_s30  ;;  %p1367_p8 = por %p165_p5, %p49_p1 }
  0x13   : > { %p1371_p9 = por %p171_p7, %p170_p6  ;;  %s37_s11 = ssub.s32 %s1262_s26, %s1621_s30 }
  0x14   : > { %s1599_s9 = scalar_select %p1367_p8, 1, 0 }
  0x15   : > { %s1600_s10 = scalar_select %p1371_p9, 1, 0 }
  0x16   : > { %p948_p10 = scmp.ge.s32.totalorder %s1266_s27, 1  ;;  %s39_s12 = sor.u32 %s38_s7, %s37_s11 }
  0x17   : > { %p178_p11 = scmp.lt.s32.totalorder %s1266_s27, 5  ;;  %p40_p12 = scmp.eq.s32.totalorder %s39_s12, 0 }
  0x18   : > { %p1383_p0 = scmp.eq.s32.totalorder %s946_s4, 0  ;;  %s1268_s16 = smov [#allocation4]  }
  0x19   : > { %p1379_p13 = pnand %p948_p10, %p178_p11  ;;  %s190_s17 = sshll.u32 %s1268_s16, 4  ;;  %s191_s17 = int_to_ptr.vmem [resolvable:$true] %s190_s17 }
  0x1a   : > { %s1388_s15 = scalar_select %p40_p12, %s1246_s22, %s42_s6  }
  0x1b   : > { %p1047_p1 = pneg %p1379_p13  ;;  %s1155_s18 = scalar_lea.vmem %s191_s17, 1024 }
  0x1c   : > { %1603 = sst [smem:[#allocation12_spill]] %s1388_s15  ;;  %p1156_p5 = scmp.ne.s32.totalorder %s191_s17, %s1155_s18 }
  0x1d   : > { %p1048_p2 = pnand %p1383_p0, %p1047_p1  ;;  %p1163_p10 = scmp.lt.s32.totalorder %s191_s17, %s191_s17 }
  0x1e   : > { %p1164_p11 = scmp.lt.s32.totalorder %s1155_s18, %s1155_s18 }
  0x1f   : > { %p1146_p4 = pneg %p1048_p2 }
  0x20   : > { %p1165_p9 = por %p1164_p11, %p1163_p10 }
  0x21   : > { %p1158_p6 = pnand %p1156_p5, %p1146_p4 }
  0x23   : > { %p1159_p7 = pneg %p1158_p6 }
  0x25   : > { %p1166_p8 = pnand %p1165_p9, %p1159_p7 }
  0x27   : > { %1169 = shalt.err (!%p1166_p8)
}
  0x28   : > { %s1269_s19 = smov 64   ;;  %s1270_s4 = smov 4  }
  0x29   : > { %1050 = dma.hbm_to_vmem [thread:$0]  (!%p1048_p2), %s1588_s1, 1024, %s191_s17, [#allocation5], %s1269_s19, %s1269_s19, %s1270_s4  }
  0x2a   : > { %p950_p12 = scmp.ge.s32.totalorder %s1266_s27, 4 }
  0x2c   : > { %209 = sbr.rel (%p950_p12) target bundleno = 65 (0x41), region = 32 }
  0x31   : > { %212 = sbr.rel (!%p1359_p3) target bundleno = 65 (0x41), region = 36  ;;  %s214_s7 = sand.u32 (%p1359_p3), 1, %s1246_s22  }
  0x32   : > { %s952_s11 = sshll.u32 (%p1359_p3), %s1262_s26, 5  ;;  %s951_s12 = sshll.u32 (%p1359_p3), %s214_s7, 6 }
  0x33   : > { %s218_s16 = sadd.s32 (%p1359_p3), %s1258_s25, %s952_s11  ;;  %s216_s8 = scalar_lea.vmem (%p1359_p3), [#allocation3], %s951_s12 }
  0x34   : > { %s953_s18 = sshll.u32 (%p1359_p3), %s218_s16, 2 }
  0x35   : > { %s1406_s15 = scalar_lea.vmem (%p1359_p3), %s1587_s0, %s953_s18 }
  0x36   : > { %v237_v1 = vld [vmem:[%s1406_s15] sm:$0xf]  ;;  %v239_v2 = vld [vmem:[%s1406_s15 + $0x8] sm:$0xf]  ;;  %v241_v3 = vld [vmem:[%s1406_s15 + $0x10] sm:$0xf] }
  0x37   : > { %238 = vst [vmem:[%s216_s8] sm:$0xf] %v237_v1  ;;  %240 = vst [vmem:[%s216_s8 + $0x4] sm:$0xf] %v239_v2  ;;  %v243_v4 = vld [vmem:[%s1406_s15 + $0x18] sm:$0xf] }
  0x38   : > { %242 = vst [vmem:[%s216_s8 + $0x8] sm:$0xf] %v241_v3  ;;  %v245_v5 = vld [vmem:[%s1406_s15 + $0x20] sm:$0xf]  ;;  %v247_v6 = vld [vmem:[%s1406_s15 + $0x28] sm:$0xf] }
  0x39   : > { %244 = vst [vmem:[%s216_s8 + $0xc] sm:$0xf] %v243_v4  ;;  %246 = vst [vmem:[%s216_s8 + $0x10] sm:$0xf] %v245_v5  ;;  %v249_v7 = vld [vmem:[%s1406_s15 + $0x30] sm:$0xf] }
  0x3a   : > { %248 = vst [vmem:[%s216_s8 + $0x14] sm:$0xf] %v247_v6  ;;  %v251_v8 = vld [vmem:[%s1406_s15 + $0x38] sm:$0xf]  ;;  %v253_v9 = vld [vmem:[%s1406_s15 + $0x40] sm:$0xf] }
  0x3b   : > { %250 = vst [vmem:[%s216_s8 + $0x18] sm:$0xf] %v249_v7  ;;  %252 = vst [vmem:[%s216_s8 + $0x1c] sm:$0xf] %v251_v8  ;;  %v255_v10 = vld [vmem:[%s1406_s15 + $0x48] sm:$0xf] }
  0x3c   : > { %254 = vst [vmem:[%s216_s8 + $0x20] sm:$0xf] %v253_v9  ;;  %v257_v11 = vld [vmem:[%s1406_s15 + $0x50] sm:$0xf]  ;;  %v259_v12 = vld [vmem:[%s1406_s15 + $0x58] sm:$0xf] }
  0x3d   : > { %256 = vst [vmem:[%s216_s8 + $0x24] sm:$0xf] %v255_v10  ;;  %258 = vst [vmem:[%s216_s8 + $0x28] sm:$0xf] %v257_v11  ;;  %v261_v13 = vld [vmem:[%s1406_s15 + $0x60] sm:$0xf] }
  0x3e   : > { %260 = vst [vmem:[%s216_s8 + $0x2c] sm:$0xf] %v259_v12  ;;  %v263_v14 = vld [vmem:[%s1406_s15 + $0x68] sm:$0xf]  ;;  %v265_v15 = vld [vmem:[%s1406_s15 + $0x70] sm:$0xf] }
  0x3f   : > { %262 = vst [vmem:[%s216_s8 + $0x30] sm:$0xf] %v261_v13  ;;  %264 = vst [vmem:[%s216_s8 + $0x34] sm:$0xf] %v263_v14  ;;  %v267_v16 = vld [vmem:[%s1406_s15 + $0x78] sm:$0xf] }
  0x40   : > { %266 = vst [vmem:[%s216_s8 + $0x38] sm:$0xf] %v265_v15  ;;  %268 = vst [vmem:[%s216_s8 + $0x3c] sm:$0xf] %v267_v16 }
  0x41 PF: > { %327 = sbr.rel (%p1379_p13) target bundleno = 367 (0x16f), region = 77  ;;  %s1427_s29 = sand.u32 (!%p1379_p13), 1, %s1242_s21  }
  0x42   : > { %s955_s30 = sshll.u32 (!%p1379_p13), %s1427_s29, 6 }
  0x43   : > { %s1430_s17 = scalar_lea.vmem (!%p1379_p13), [#allocation3], %s955_s30 }
  0x46   : > { %1229 = dma.done.wait (%p1383_p0), [#allocation5], 1024  }
  0x47   : > { %1231 = vsyncadd (%p1383_p0), [#allocation5], 4294966272  ;;  %v1271_v17 = vmov 0   ;;  %v1128_v18 = vld [vmem:[%s1430_s17 + $0x38] sm:$0xff]   ;;  %v1129_v19 = vld [vmem:[%s1430_s17 + $0x30] sm:$0xff]   ;;  %s973_s28 = sshll.u32 %s1254_s24, 1 }
  0x48   : > { %1126 = vset.pattern.permute.xlu0 %v1271_v17  ;;  %1127 = vset.pattern.permute.xlu1 %v1271_v17  ;;  %v1130_v20 = vld [vmem:[%s1430_s17 + $0x28] sm:$0xff]   ;;  %v393_v21 = vld [vmem:[%s1589_s2] sm:$0xff]  ;;  %v396_v24 = vld [vmem:[%s1589_s2 + $0x18] sm:$0xff]  ;;  %s854_s6 = sadd.s32 %s1250_s23, %s973_s28  ;;  %s359_s11 = scalar_lea.vmem [#allocation7], %s1427_s29 }
  0x49   : > { %993 = vmatprep.subr.bf16.mxu0 %v1128_v18  ;;  %1025 = vmatprep.subr.bf16.mxu1 %v1128_v18  ;;  %v395_v22 = vld [vmem:[%s1589_s2 + $0x10] sm:$0xff]  ;;  %v394_v23 = vld [vmem:[%s1589_s2 + $0x8] sm:$0xff]  ;;  %v1132_v26 = vld [vmem:[%s1430_s17 + $0x18] sm:$0xff]   ;;  %s974_s7 = sshll.u32 %s854_s6, 4  ;;  %s858_s12 = sshll.u32 %s359_s11, 4  ;;  %s859_s12 = int_to_ptr.vmem [resolvable:$true] %s858_s12 }
  0x4a   : > { %994 = vmatpush3.bf16.msra.mxu0 %v1128_v18  ;;  %1033 = vmatpush3.bf16.msra.mxu1 %v1128_v18  ;;  %v1131_v25 = vld [vmem:[%s1430_s17 + $0x20] sm:$0xff]   ;;  %v1133_v33 = vld [vmem:[%s1430_s17 + $0x10] sm:$0xff]   ;;  %v1134_v36 = vld [vmem:[%s1430_s17 + $0x8] sm:$0xff]   ;;  %s856_s8 = scalar_lea.hbm %s1592_s5, %s974_s7  ;;  %s844_s24 = scalar_lea.sflag [#allocation6], %s1427_s29 }
  0x4b   : > { %995 = vmatprep.subr.bf16.mxu0 %v1129_v19  ;;  %1026 = vmatprep.subr.bf16.mxu1 %v1129_v19  ;;  %v397_v27 = vld [vmem:[%s1589_s2 + $0x20] sm:$0xff]  ;;  %v398_v28 = vld [vmem:[%s1589_s2 + $0x28] sm:$0xff]  ;;  %v700_v34 = vld [vmem:[%s1590_s3 + $0x10] sm:$0xff]  ;;  %s1170_s30 = scalar_lea.vmem %s859_s12, 16  ;;  %p1604_p8 = scmp.ne.s32.totalorder %s1599_s9, 0 }
  0x4c   : > { %411 = vperm.xlu0 %1126, %v393_v21   ;;  %421 = vperm.xlu1 %1127, %v395_v22   ;;  %v1136_v29 = vld [vmem:[#allocation4] sm:$0xff]   ;;  %v701_v35 = vld [vmem:[%s1590_s3 + $0x18] sm:$0xff]  ;;  %v399_v37 = vld [vmem:[%s1589_s2 + $0x30] sm:$0xff]  ;;  %p1171_p3 = scmp.ne.s32.totalorder %s859_s12, %s1170_s30  ;;  %s1272_s23 = smov [#allocation7]  }
  0x4d   : > { %v1137_v30 = vld [vmem:[#allocation4 + $0x20] sm:$0xff]   ;;  %1009 = vmatprep.mubr.bf16.mxu0 %v1136_v29  ;;  %v400_v40 = vld [vmem:[%s1589_s2 + $0x38] sm:$0xff]  ;;  %v1138_v42 = vld [vmem:[#allocation4 + $0x8] sm:$0xff]   ;;  %s1174_s13 = sshll.u32 %s1272_s23, 4  ;;  %s1175_s13 = int_to_ptr.vmem [resolvable:$false] %s1174_s13 }
  0x4e   : > { %996 = vmatpush3.bf16.msra.mxu0 %v1129_v19  ;;  %1034 = vmatpush3.bf16.msra.mxu1 %v1129_v19  ;;  %v698_v31 = vld [vmem:[%s1590_s3] sm:$0xff]  ;;  %v699_v32 = vld [vmem:[%s1590_s3 + $0x8] sm:$0xff]  ;;  %v1140_v45 = vld [vmem:[#allocation4 + $0x10] sm:$0xff]   ;;  %p1172_p9 = pnand %p1171_p3, %p1604_p8  ;;  %s1176_s14 = scalar_lea.vmem %s1175_s13, 32 }
  0x4f   : > { %997 = vmatprep.subr.bf16.mxu0 %v1130_v20  ;;  %1027 = vmatprep.subr.bf16.mxu1 %v1130_v20  ;;  %v702_v38 = vld [vmem:[%s1590_s3 + $0x20] sm:$0xff]  ;;  %v703_v41 = vld [vmem:[%s1590_s3 + $0x28] sm:$0xff]  ;;  %v1141_v46 = vld [vmem:[#allocation4 + $0x30] sm:$0xff]   ;;  %p1177_p0 = scmp.lt.s32.totalorder %s859_s12, %s1175_s13  ;;  %p1178_p1 = scmp.lt.s32.totalorder %s1176_s14, %s1170_s30 }
  0x50   : > { %416 = vperm.xlu0 %1126, %v394_v23   ;;  %426 = vperm.xlu1 %1127, %v396_v24   ;;  %v1135_v39 = vld [vmem:[%s1430_s17] sm:$0xff]   ;;  %v1139_v43 = vld [vmem:[#allocation4 + $0x28] sm:$0xff]   ;;  %v705_v49 = vld [vmem:[%s1590_s3 + $0x38] sm:$0xff]  ;;  %p1173_p13 = pneg %p1172_p9 }
  0x51   : > { %1017 = vmatprep.mubr.bf16.mxu1 %v1137_v30  ;;  %v401_v44 = vld [vmem:[%s1589_s2 + $0x40] sm:$0xff]  ;;  %v704_v47 = vld [vmem:[%s1590_s3 + $0x30] sm:$0xff]  ;;  %v402_v48 = vld [vmem:[%s1589_s2 + $0x48] sm:$0xff]  ;;  %p1179_p2 = por %p1178_p1, %p1177_p0 }
  0x52   : > { %998 = vmatpush3.bf16.msra.mxu0 %v1130_v20  ;;  %1035 = vmatpush3.bf16.msra.mxu1 %v1130_v20  ;;  %v1142_v50 = vld [vmem:[#allocation4 + $0x18] sm:$0xff]   ;;  %v403_v52 = vld [vmem:[%s1589_s2 + $0x50] sm:$0xff]  ;;  %v707_v55 = vld [vmem:[%s1590_s3 + $0x48] sm:$0xff] }
  0x53   : > { %999 = vmatprep.subr.bf16.mxu0 %v1131_v25  ;;  %1028 = vmatprep.subr.bf16.mxu1 %v1131_v25  ;;  %v1143_v51 = vld [vmem:[#allocation4 + $0x38] sm:$0xff]   ;;  %v708_v57 = vld [vmem:[%s1590_s3 + $0x50] sm:$0xff]  ;;  %v406_v58 = vld [vmem:[%s1589_s2 + $0x68] sm:$0xff]  ;;  %p1180_p4 = pnand %p1179_p2, %p1173_p13 }
  0x54   : > { %431 = vperm.xlu0 %1126, %v397_v27   ;;  %436 = vperm.xlu1 %1127, %v398_v28   ;;  %v706_v53 = vld [vmem:[%s1590_s3 + $0x40] sm:$0xff]  ;;  %v404_v54 = vld [vmem:[%s1589_s2 + $0x58] sm:$0xff]  ;;  %v407_v60 = vld [vmem:[%s1589_s2 + $0x70] sm:$0xff] }
  0x55   : > { %v405_v56 = vld [vmem:[%s1589_s2 + $0x60] sm:$0xff]  ;;  %v709_v59 = vld [vmem:[%s1590_s3 + $0x58] sm:$0xff]  ;;  %v711_v63 = vld [vmem:[%s1590_s3 + $0x68] sm:$0xff] }
  0x56   : > { %1000 = vmatpush3.bf16.msra.mxu0 %v1131_v25  ;;  %1036 = vmatpush3.bf16.msra.mxu1 %v1131_v25  ;;  %v710_v61 = vld [vmem:[%s1590_s3 + $0x60] sm:$0xff]  ;;  %v408_v62 = vld [vmem:[%s1589_s2 + $0x78] sm:$0xff]  ;;  %v712_v0 = vld [vmem:[%s1590_s3 + $0x70] sm:$0xff] }
  0x57   : > { %1001 = vmatprep.subr.bf16.mxu0 %v1132_v26  ;;  %1029 = vmatprep.subr.bf16.mxu1 %v1132_v26  ;;  %v713_v1 = vld [vmem:[%s1590_s3 + $0x78] sm:$0xff]  ;;  %v831_v2 = vld [vmem:[#allocation2] sm:$0x1] }
  0x58   : > { %716 = vperm.xlu0 %1126, %v698_v31   ;;  %721 = vperm.xlu1 %1127, %v699_v32  }
  0x5a   : > { %1002 = vmatpush3.bf16.msra.mxu0 %v1132_v26  ;;  %1037 = vmatpush3.bf16.msra.mxu1 %v1132_v26 }
  0x5b   : > { %1003 = vmatprep.subr.bf16.mxu0 %v1133_v33  ;;  %1030 = vmatprep.subr.bf16.mxu1 %v1133_v33 }
  0x5c   : > { %726 = vperm.xlu0 %1126, %v700_v34   ;;  %731 = vperm.xlu1 %1127, %v701_v35  }
  0x5e   : > { %1004 = vmatpush3.bf16.msra.mxu0 %v1133_v33  ;;  %1038 = vmatpush3.bf16.msra.mxu1 %v1133_v33 }
  0x5f   : > { %1005 = vmatprep.subr.bf16.mxu0 %v1134_v36  ;;  %1031 = vmatprep.subr.bf16.mxu1 %v1134_v36 }
  0x60   : > { %441 = vperm.xlu0 %1126, %v399_v37   ;;  %736 = vperm.xlu1 %1127, %v702_v38  }
  0x62   : > { %1006 = vmatpush3.bf16.msra.mxu0 %v1134_v36  ;;  %1039 = vmatpush3.bf16.msra.mxu1 %v1134_v36 }
  0x63   : > { %1007 = vmatprep.subr.bf16.mxu0 %v1135_v39  ;;  %1032 = vmatprep.subr.bf16.mxu1 %v1135_v39 }
  0x64   : > { %446 = vperm.xlu0 %1126, %v400_v40   ;;  %741 = vperm.xlu1 %1127, %v703_v41  }
  0x66   : > { %1008 = vmatpush3.bf16.msra.mxu0 %v1135_v39  ;;  %1040 = vmatpush3.bf16.msra.mxu1 %v1135_v39 }
  0x68   : > { %451 = vperm.xlu0 %1126, %v401_v44   ;;  %746 = vperm.xlu1 %1127, %v704_v47  }
  0x69   : > { %1010 = vmatmul.mubr.bf16.vlgmr.msra.gmra.mxu0 %v1138_v42  ;;  %1018 = vmatmul.mubr.bf16.vlgmr.msra.gmra.mxu1 %v1139_v43 }
  0x6a   : > { %1013 = vmatprep.mubr.bf16.mxu0 %v1140_v45  ;;  %1021 = vmatprep.mubr.bf16.mxu1 %v1141_v46 }
  0x6c   : > { %456 = vperm.xlu0 %1126, %v402_v48   ;;  %751 = vperm.xlu1 %1127, %v705_v49  }
  0x70   : > { %461 = vperm.xlu0 %1126, %v403_v52   ;;  %756 = vperm.xlu1 %1127, %v706_v53  }
  0x71   : > { %1014 = vmatmul.mubr.bf16.gmra.mxu0 %v1142_v50  ;;  %1022 = vmatmul.mubr.bf16.gmra.mxu1 %v1143_v51 }
  0x74   : > { %466 = vperm.xlu0 %1126, %v404_v54   ;;  %761 = vperm.xlu1 %1127, %v707_v55  }
  0x78   : > { %471 = vperm.xlu0 %1126, %v405_v56   ;;  %766 = vperm.xlu1 %1127, %v708_v57  }
  0x7c   : > { %476 = vperm.xlu0 %1126, %v406_v58   ;;  %771 = vperm.xlu1 %1127, %v709_v59  }
  0x80   : > { %481 = vperm.xlu0 %1126, %v407_v60   ;;  %776 = vperm.xlu1 %1127, %v710_v61  }
  0x84   : > { %486 = vperm.xlu0 %1126, %v408_v62   ;;  %781 = vperm.xlu1 %1127, %v711_v63  }
  0x88   : > { %786 = vperm.xlu0 %1126, %v712_v0   ;;  %791 = vperm.xlu1 %1127, %v713_v1  }
  0x8c   : > { %834 = vperm.xlu0 %1126, %v831_v2  }
  0xc7   : > { %v412_v3 = vpop.permute.xlu0 %411  ;;  %v422_v4 = vpop.permute.xlu1 %421 }
  0xcb   : > { %v417_v5 = vpop.permute.xlu0 %416  ;;  %v427_v6 = vpop.permute.xlu1 %426 }
  0xcf   : > { %v432_v7 = vpop.permute.xlu0 %431  ;;  %v437_v8 = vpop.permute.xlu1 %436 }
  0xd3   : > { %v717_v9 = vpop.permute.xlu0 %716  ;;  %v722_v10 = vpop.permute.xlu1 %721 }
  0xd7   : > { %v727_v11 = vpop.permute.xlu0 %726  ;;  %v732_v12 = vpop.permute.xlu1 %731 }
  0xdb   : > { %v442_v13 = vpop.permute.xlu0 %441  ;;  %v737_v14 = vpop.permute.xlu1 %736 }
  0xdf   : > { %v447_v15 = vpop.permute.xlu0 %446  ;;  %v742_v16 = vpop.permute.xlu1 %741 }
  0xe3   : > { %v452_v17 = vpop.permute.xlu0 %451  ;;  %v747_v18 = vpop.permute.xlu1 %746 }
  0xe7   : > { %v457_v19 = vpop.permute.xlu0 %456  ;;  %v752_v20 = vpop.permute.xlu1 %751 }
  0xeb   : > { %v462_v21 = vpop.permute.xlu0 %461  ;;  %v757_v24 = vpop.permute.xlu1 %756 }
  0xef   : > { %v467_v30 = vpop.permute.xlu0 %466  ;;  %v762_v33 = vpop.permute.xlu1 %761 }
  0xf3   : > { %v472_v42 = vpop.permute.xlu0 %471  ;;  %v767_v52 = vpop.permute.xlu1 %766 }
  0xf7   : > { %v477_v1 = vpop.permute.xlu0 %476 }
 0x129   : > { %v1011_v22 = vpop.f32.mrf.mxu0  ;;  %v1019_v23 = vpop.f32.mrf.mxu1 }
 0x12a   : > { %v628_v31 = vadd.f32 %v1011_v22, %v422_v4  ;;  %v482_v22 = vpop.permute.xlu0 %481 }
 0x12b   : > { %v619_v25 = vpop.f32.mrf.mxu0  ;;  %v651_v26 = vpop.f32.mrf.mxu1 }
 0x12c   : > { %v620_v27 = vadd.f32 %v619_v25, %v412_v3  ;;  %v684_v39 = vmax.f32 %v628_v31, 0.0  ;;  %v652_v59 = vadd.f32 %v651_v26, %v452_v17 }
 0x12d   : > { %v1012_v28 = vpop.f32.mrf.mxu0  ;;  %v1020_v29 = vpop.f32.mrf.mxu1 }
 0x12e   : > { %v682_v34 = vmax.f32 %v620_v27, 0.0  ;;  %v631_v35 = vadd.f32 %v1012_v28, %v427_v6  ;;  %v796_v49 = vmul.f32 %v727_v11, %v684_v39  ;;  %v772_v6 = vpop.permute.xlu1 %771 }
 0x12f   : > { %v622_v32 = vpop.f32.mrf.mxu0  ;;  %v654_v37 = vpop.f32.mrf.mxu1 }
 0x130   : > { %v623_v36 = vadd.f32 %v622_v32, %v417_v5  ;;  %v794_v43 = vmul.f32 %v717_v9, %v682_v34  ;;  %v685_v44 = vmax.f32 %v631_v35, 0.0  ;;  %v655_v2 = vadd.f32 %v654_v37, %v457_v19 }
 0x131   : > { %v1015_v38 = vpop.f32.mrf.mxu0  ;;  %v1023_v46 = vpop.f32.mrf.mxu1  ;;  %v660_v9 = vadd.f32 %v1019_v23, %v462_v21 }
 0x132   : > { %v683_v40 = vmax.f32 %v623_v36, 0.0  ;;  %v644_v51 = vadd.f32 %v1015_v38, %v442_v13  ;;  %v797_v55 = vmul.f32 %v732_v12, %v685_v44  ;;  %v663_v13 = vadd.f32 %v1020_v29, %v467_v30  ;;  %v777_v19 = vpop.permute.xlu1 %776  ;;  %v487_v36 = vpop.permute.xlu0 %486 }
 0x133   : > { %v635_v41 = vpop.f32.mrf.mxu0  ;;  %v667_v60 = vpop.f32.mrf.mxu1  ;;  %v676_v21 = vadd.f32 %v1023_v46, %v482_v22 }
 0x134   : > { %v795_v45 = vmul.f32 %v722_v10, %v683_v40  ;;  %v636_v47 = vadd.f32 %v635_v41, %v432_v7  ;;  %v688_v61 = vmax.f32 %v644_v51, 0.0  ;;  %v690_v10 = vmax.f32 %v652_v59, 0.0 }
 0x135   : > { %v1016_v48 = vpop.f32.mrf.mxu0  ;;  %v1024_v7 = vpop.f32.mrf.mxu1  ;;  %v668_v27 = vadd.f32 %v667_v60, %v472_v42  ;;  %v693_v31 = vmax.f32 %v663_v13, 0.0  ;;  %v696_v39 = vmax.f32 %v676_v21, 0.0 }
 0x136   : > { %v810_v50 = vadd.f32 %v795_v45, %v794_v43  ;;  %v686_v53 = vmax.f32 %v636_v47, 0.0  ;;  %v647_v57 = vadd.f32 %v1016_v48, %v447_v15  ;;  %v800_v11 = vmul.f32 %v747_v18, %v688_v61  ;;  %v782_v38 = vpop.permute.xlu1 %781 }
 0x137   : > { %v638_v54 = vpop.f32.mrf.mxu0  ;;  %v691_v15 = vmax.f32 %v655_v2, 0.0  ;;  %v670_v25 = vpop.f32.mrf.mxu1  ;;  %v802_v26 = vmul.f32 %v757_v24, %v690_v10  ;;  %v694_v23 = vmax.f32 %v668_v27, 0.0  ;;  %v805_v29 = vmul.f32 %v772_v6, %v693_v31 }
 0x138   : > { %v811_v56 = vadd.f32 %v810_v50, %v796_v49  ;;  %v639_v58 = vadd.f32 %v638_v54, %v437_v8  ;;  %v798_v62 = vmul.f32 %v737_v14, %v686_v53  ;;  %v689_v4 = vmax.f32 %v647_v57, 0.0 }
 0x139   : > { %v692_v14 = vmax.f32 %v660_v9, 0.0  ;;  %v803_v32 = vmul.f32 %v762_v33, %v691_v15  ;;  %v671_v34 = vadd.f32 %v670_v25, %v477_v1  ;;  %v679_v30 = vadd.f32 %v1024_v7, %v487_v36  ;;  %v787_v33 = vpop.permute.xlu0 %786 }
 0x13a   : > { %v812_v63 = vadd.f32 %v811_v56, %v797_v55  ;;  %v687_v0 = vmax.f32 %v639_v58, 0.0  ;;  %v801_v8 = vmul.f32 %v752_v20, %v689_v4  ;;  %v806_v40 = vmul.f32 %v777_v19, %v694_v23  ;;  %v792_v46 = vpop.permute.xlu1 %791 }
 0x13b   : > { %v804_v35 = vmul.f32 %v767_v52, %v692_v14  ;;  %v695_v20 = vmax.f32 %v671_v34, 0.0  ;;  %v697_v41 = vmax.f32 %v679_v30, 0.0  ;;  %v808_v44 = vmul.f32 %v787_v33, %v696_v39 }
 0x13c   : > { %v813_v3 = vadd.f32 %v812_v63, %v798_v62  ;;  %v799_v5 = vmul.f32 %v742_v16, %v687_v0  ;;  %v837_v49 = vlaneseq }
 0x13d   : > { %v807_v42 = vmul.f32 %v782_v38, %v695_v20  ;;  %v809_v47 = vmul.f32 %v792_v46, %v697_v41  ;;  %v835_v57 = vpop.permute.xlu0 %834 }
 0x13e   : > { %v814_v12 = vadd.f32 %v813_v3, %v799_v5  ;;  %v838_v52 = vshrl.u32 %v837_v49, 7 }
 0x140   : > { %v815_v17 = vadd.f32 %v814_v12, %v800_v11  ;;  %v839_v55 = vsub.s32 0, %v838_v52 }
 0x142   : > { %v816_v28 = vadd.f32 %v815_v17, %v801_v8  ;;  %v840_v59 = vrot.slane %v835_v57, %v839_v55 }
 0x144   : > { %v817_v16 = vadd.f32 %v816_v28, %v802_v26 }
 0x146   : > { %v818_v18 = vadd.f32 %v817_v16, %v803_v32 }
 0x148   : > { %v819_v37 = vadd.f32 %v818_v18, %v804_v35 }
 0x14a   : > { %v820_v24 = vadd.f32 %v819_v37, %v805_v29 }
 0x14c   : > { %v821_v43 = vadd.f32 %v820_v24, %v806_v40 }
 0x14e   : > { %v822_v45 = vadd.f32 %v821_v43, %v807_v42 }
 0x150   : > { %v823_v48 = vadd.f32 %v822_v45, %v808_v44 }
 0x152   : > { %v824_v50 = vadd.f32 %v823_v48, %v809_v47 }
 0x154   : > { %v825_v51 = vrot.slane %v824_v50, 4 }
 0x156   : > { %v826_v53 = vadd.f32 %v825_v51, %v824_v50 }
 0x158   : > { %v827_v54 = vrot.slane %v826_v53, 2 }
 0x15a   : > { %v828_v56 = vadd.f32 %v827_v54, %v826_v53 }
 0x15c   : > { %v829_v58 = vrot.slane %v828_v56, 1 }
 0x15e   : > { %v830_v60 = vadd.f32 %v829_v58, %v828_v56 }
 0x160   : > { %v841_v61 = vadd.f32 %v840_v59, %v830_v60 }
 0x162   : > { %842 = vst [vmem:[%s359_s11] sm:$0x1] %v841_v61 }
 0x163   : > { %1183 = shalt.err (!%p1180_p4)
}
 0x164   : > { %s1184_s17 = scalar_lea.hbm %s856_s8, 16  ;;  %s1188_s19 = scalar_lea.hbm %s1592_s5, 64 }
 0x165   : > { %p1185_p5 = scmp.ne.s32.totalorder %s856_s8, %s1184_s17  ;;  %p1189_p10 = scmp.lt.s32.totalorder %s856_s8, %s1592_s5 }
 0x166   : > { %p1190_p11 = scmp.lt.s32.totalorder %s1188_s19, %s1184_s17 }
 0x167   : > { %p1186_p6 = pnand %p1185_p5, %p1604_p8 }
 0x168   : > { %p1191_p12 = por %p1190_p11, %p1189_p10 }
 0x169   : > { %p1187_p7 = pneg %p1186_p6 }
 0x16b   : > { %p1192_p3 = pnand %p1191_p12, %p1187_p7 }
 0x16d   : > { %1195 = shalt.err (!%p1192_p3)
}
 0x16e   : > { %1045 = dma.vmem_to_hbm [thread:$0]  (%p1604_p8), %s859_s12, 16, %s856_s8, %s844_s24  }
 0x16f PF: > { %p1057_p9 = scmp.ge.s32.totalorder %s1266_s27, 2  ;;  %s870_s6 = sand.u32 1, %s1238_s20  }
 0x170   : > { %p1605_p13 = scmp.ne.s32.totalorder %s1600_s10, 0  ;;  %s871_s7 = scalar_lea.sflag [#allocation6], %s870_s6 }
 0x172   : > { %p1052_p0 = pnand %p1057_p9, %p1605_p13 }
 0x174   : > { %p1053_p1 = pneg %p1052_p0 }
 0x176   : > { %1233 = dma.done.wait (%p1053_p1), %s871_s7, 16  }
 0x177   : > { %1235 = vsyncadd (%p1053_p1), %s871_s7, 4294967280  ;;  %s21_s27 = sadd.s32 1, %s1266_s27   ;;  %s1606_s11 = sld [smem:[#allocation12_spill]] }
 0x178   : > { %p18_p2 = scmp.ge.s32.totalorder %s21_s27, 6   ;;  %s1607_s9 = sld [smem:[#allocation10_spill]] }
 0x179   : > { %s1608_s12 = sld [smem:[#allocation11_spill]]  ;;  %s1609_s20 = smov %s1242_s21 }
 0x17a   : > { %s1610_s21 = smov %s1246_s22  ;;  %s1612_s23 = smov %s1258_s25 }
 0x17b   : > { %s1613_s24 = smov %s1262_s26  ;;  %20 = sbr.rel (!%p18_p2) target bundleno = 9 (0x9), region = 126 }
 0x17d   : > { %s1611_s22 = smov %s1606_s11 }
 0x17e   : > { %s1614_s25 = smov %s1607_s9 }
 0x17f   : > { %s1615_s26 = smov %s1608_s12 }
 0x180   :  { %875 = vsyncpa [#allocation5], 1 }
 0x181   :  { %877 = vsyncpa [#allocation5 + $0x1], 1 }
 0x182   :  { %878 = vsyncpa [#allocation6], 1 }
 0x183   :  { %880 = vsyncpa [#allocation6 + $0x1], 1 }

</bundles_post_ra>
